<compile_context>
chip_gen: v6e
topology: v6e:2x2x1
jax: 0.10.0
libtpu: 0.0.40
codegen_flags: <defaults>
</compile_context>

<pallas_src>
import jax
import jax.numpy as jnp
from jax import lax
from jax.experimental import pallas as pl
from jax.experimental.pallas import tpu as pltpu

LANE = 128  # TPU lane width; batch tile must be a multiple of this.


def _round_up(n, m):
    return ((n + m - 1) // m) * m


def mlp_kernel(x_ref, w1_ref, b1_ref, w2_ref, b2_ref, w3_ref, b3_ref, o_ref):
    # x_ref: (TB, 7) f32 tile of the input (row-major, as supplied by the caller).
    xb = x_ref[...].astype(jnp.bfloat16)

    # fc1: h1 = W1 @ x^T -> (64, TB).  Contract the feature dim of both operands
    # (rhs-transposed matmul) so the batch lands on the lane axis.  f32 accumulate.
    h1 = lax.dot_general(
        w1_ref[...], xb,
        dimension_numbers=(((1,), (1,)), ((), ())),
        preferred_element_type=jnp.float32,
    )
    h1 = jnp.maximum(h1 + b1_ref[...], 0.0)  # bias + ReLU in f32
    # dropout(p=0.5): identity in eval mode.

    # fc2: (32, 64) @ (64, TB) -> (32, TB)
    h2 = jnp.dot(w2_ref[...], h1.astype(jnp.bfloat16),
                 preferred_element_type=jnp.float32)
    h2 = jnp.maximum(h2 + b2_ref[...], 0.0)
    # dropout(p=0.5): identity in eval mode.

    # fc3 logits: (2, 32) @ (32, TB) -> (2, TB), lane-dense store.
    o_ref[...] = (jnp.dot(w3_ref[...], h2.astype(jnp.bfloat16),
                          preferred_element_type=jnp.float32)
                  + b3_ref[...])


def _choose_tiling(B, max_tile):
    b128 = _round_up(B, LANE)
    n_tiles = pl.cdiv(b128, max_tile)
    if b128 >= 2 * LANE:
        # v7x has 2 TensorCores: keep at least two grid steps so the "parallel"
        # axis can be sharded across both (harmless extra step on v5e/v6e).
        n_tiles = max(n_tiles, 2)
    tb = _round_up(pl.cdiv(B, n_tiles), LANE)
    return tb, n_tiles, n_tiles * tb


def disease_predictor_forward(x, params, *, max_tile=8192):
    """x: (B, 7) float32 -> (B, 2) float32 logits (eval-mode forward)."""
    w1, b1, w2, b2, w3, b3 = params  # weights (out, in) f32, biases (out, 1) f32
    B, F = x.shape
    assert F == 7

    TB, n_tiles, B_pad = _choose_tiling(B, max_tile)

    # Row-pad only (no transpose, no extra layout copy beyond the pad).  Padded
    # rows produce bias-only logits in their own lanes and are sliced off below.
    x_pad = x if B_pad == B else jnp.pad(x, ((0, B_pad - B), (0, 0)))

    # bf16 operands for the MXU (accumulation stays f32 inside the kernel).
    w1b = w1.astype(jnp.bfloat16)
    w2b = w2.astype(jnp.bfloat16)
    w3b = w3.astype(jnp.bfloat16)

    flops = 2 * B_pad * (7 * 64 + 64 * 32 + 32 * 2)
    bytes_accessed = (4 * B_pad * 7 + 4 * B_pad * 2
                      + 2 * (w1b.size + w2b.size + w3b.size)
                      + 4 * (b1.size + b2.size + b3.size))
    cost = pl.CostEstimate(flops=int(flops), transcendentals=0,
                           bytes_accessed=int(bytes_accessed))

    const = lambda shape: pl.BlockSpec(shape, lambda i: (0, 0))

    out_t = pl.pallas_call(
        mlp_kernel,
        out_shape=jax.ShapeDtypeStruct((2, B_pad), jnp.float32),
        grid=(n_tiles,),
        in_specs=[
            pl.BlockSpec((TB, 7), lambda i: (i, 0)),  # x tile, streamed over batch
            const((64, 7)),    # W1 (bf16, VMEM-resident)
            const((64, 1)),    # b1 (f32)
            const((32, 64)),   # W2
            const((32, 1)),    # b2
            const((2, 32)),    # W3
            const((2, 1)),     # b3
        ],
        out_specs=pl.BlockSpec((2, TB), lambda i: (0, i)),
        compiler_params=pltpu.CompilerParams(
            dimension_semantics=("parallel",),
        ),
        cost_estimate=cost,
    )(x_pad, w1b, b1, w2b, b2, w3b, b3)

    out = out_t if B_pad == B else out_t[:, :B]
    return out.T  # (B, 2) logits


def init_params(key):
    """Deterministic synthetic parameters matching nn.Linear shapes (out, in)."""
    ks = jax.random.split(key, 6)

    def linear(kw, kb, fan_in, fan_out):
        bound = 1.0 / jnp.sqrt(fan_in)
        w = jax.random.uniform(kw, (fan_out, fan_in), jnp.float32, -bound, bound)
        # biases kept (out, 1) so they broadcast over the lane (batch) axis
        b = jax.random.uniform(kb, (fan_out, 1), jnp.float32, -bound, bound)
        return w, b

    w1, b1 = linear(ks[0], ks[1], 7, 64)
    w2, b2 = linear(ks[2], ks[3], 64, 32)
    w3, b3 = linear(ks[4], ks[5], 32, 2)
    return (w1, b1, w2, b2, w3, b3)


def reference_forward_f32(x, params):
    w1, b1, w2, b2, w3, b3 = params
    h1 = jnp.maximum(x @ w1.T + b1[:, 0], 0.0)
    h2 = jnp.maximum(h1 @ w2.T + b2[:, 0], 0.0)
    return h2 @ w3.T + b3[:, 0]


def reference_forward_bf16(x, params):
    """Independent jnp implementation matching the kernel's bf16-operand /
    f32-accumulate numerics (for a tight correctness check)."""
    w1, b1, w2, b2, w3, b3 = params

    def mm(a, w):
        return jnp.dot(a.astype(jnp.bfloat16), w.astype(jnp.bfloat16).T,
                       preferred_element_type=jnp.float32)

    h1 = jnp.maximum(mm(x, w1) + b1[:, 0], 0.0)
    h2 = jnp.maximum(mm(h1, w2) + b2[:, 0], 0.0)
    return mm(h2, w3) + b3[:, 0]


if __name__ == "__main__":
    key = jax.random.PRNGKey(0)
    k_params, k_x1, k_x2 = jax.random.split(key, 3)

    params = init_params(k_params)

    # Small batch: single 128-wide tile after padding.
    x_small = jax.random.normal(k_x1, (8, 7), jnp.float32)
    out_small = jax.block_until_ready(disease_predictor_forward(x_small, params))
    assert out_small.shape == (8, 2)
    assert jnp.allclose(out_small, reference_forward_bf16(x_small, params),
                        atol=2e-3, rtol=2e-3), "small-batch mismatch (bf16 ref)"
    assert jnp.allclose(out_small, reference_forward_f32(x_small, params),
                        atol=2e-1, rtol=1e-1), "small-batch mismatch (f32 ref)"

    # Ragged batch, default tiling: 2 tiles of 256 (exercises the >=2-tile rule
    # that keeps both v7x TensorCores busy).
    x_big = jax.random.normal(k_x2, (300, 7), jnp.float32)
    out_big = jax.block_until_ready(disease_predictor_forward(x_big, params))
    assert out_big.shape == (300, 2)
    assert jnp.allclose(out_big, reference_forward_bf16(x_big, params),
                        atol=2e-3, rtol=2e-3), "tiled-batch mismatch (bf16 ref)"
    assert jnp.allclose(out_big, reference_forward_f32(x_big, params),
                        atol=2e-1, rtol=1e-1), "tiled-batch mismatch (f32 ref)"

    # Same batch, forced small tiles: 3 tiles of 128 (multi-step grid path);
    # must agree with the default-tiling result.
    out_big2 = jax.block_until_ready(
        disease_predictor_forward(x_big, params, max_tile=128))
    assert jnp.allclose(out_big2, out_big, atol=1e-5, rtol=1e-5), \
        "tiling-invariance mismatch"

    print("KERNEL_OK")
</pallas_src>

<mosaic_0001>
module attributes {stable_mosaic.version = 11 : i64} {
  func.func @mlp_kernel(%arg0: i32, %arg1: memref<128x7xf32, #tpu.memory_space<vmem>>, %arg2: memref<64x7xbf16, #tpu.memory_space<vmem>>, %arg3: memref<64x1xf32, #tpu.memory_space<vmem>>, %arg4: memref<32x64xbf16, #tpu.memory_space<vmem>>, %arg5: memref<32x1xf32, #tpu.memory_space<vmem>>, %arg6: memref<2x32xbf16, #tpu.memory_space<vmem>>, %arg7: memref<2x1xf32, #tpu.memory_space<vmem>>, %arg8: memref<2x128xf32, #tpu.memory_space<vmem>>) attributes {dimension_semantics = [#tpu.dimension_semantics<parallel>], iteration_bounds = array<i64: 1>, scalar_prefetch = 0 : i64, scratch_operands = 0 : i64, tpu.core_type = #tpu.core_type<tc>, window_params = [{transform_indices = @transform_0, window_bounds = array<i64: 128, 7>}, {pipeline_mode = #tpu.pipeline_mode<synchronous>, transform_indices = @transform_1, window_bounds = array<i64: 64, 7>}, {pipeline_mode = #tpu.pipeline_mode<synchronous>, transform_indices = @transform_2, window_bounds = array<i64: 64, 1>}, {pipeline_mode = #tpu.pipeline_mode<synchronous>, transform_indices = @transform_3, window_bounds = array<i64: 32, 64>}, {pipeline_mode = #tpu.pipeline_mode<synchronous>, transform_indices = @transform_4, window_bounds = array<i64: 32, 1>}, {pipeline_mode = #tpu.pipeline_mode<synchronous>, transform_indices = @transform_5, window_bounds = array<i64: 2, 32>}, {pipeline_mode = #tpu.pipeline_mode<synchronous>, transform_indices = @transform_6, window_bounds = array<i64: 2, 1>}, {transform_indices = @transform_7, window_bounds = array<i64: 2, 128>}]} {
    %c0 = arith.constant 0 : index
    %c0_0 = arith.constant 0 : index
    %0 = vector.load %arg1[%c0, %c0_0] : memref<128x7xf32, #tpu.memory_space<vmem>>, vector<128x7xf32>
    %1 = arith.truncf %0 : vector<128x7xf32> to vector<128x7xbf16>
    %c0_1 = arith.constant 0 : index
    %c0_2 = arith.constant 0 : index
    %2 = vector.load %arg2[%c0_1, %c0_2] : memref<64x7xbf16, #tpu.memory_space<vmem>>, vector<64x7xbf16>
    %cst = arith.constant dense<0.000000e+00> : vector<64x128xf32>
    %3 = tpu.matmul %2, %1, %cst {dimension_numbers = #tpu.dot_dimension_numbers<[1], [1], [0], [0], [0, 0, 1, 0], [], []>} : vector<64x7xbf16>, vector<128x7xbf16>, vector<64x128xf32> -> vector<64x128xf32>
    %c0_3 = arith.constant 0 : index
    %c0_4 = arith.constant 0 : index
    %4 = vector.load %arg3[%c0_3, %c0_4] : memref<64x1xf32, #tpu.memory_space<vmem>>, vector<64x1xf32>
    %5 = vector.broadcast %4 : vector<64x1xf32> to vector<64x128xf32>
    %6 = arith.addf %3, %5 : vector<64x128xf32>
    %cst_5 = arith.constant 0.000000e+00 : f32
    %7 = vector.broadcast %cst_5 : f32 to vector<64x128xf32>
    %8 = arith.maximumf %6, %7 : vector<64x128xf32>
    %c0_6 = arith.constant 0 : index
    %c0_7 = arith.constant 0 : index
    %9 = vector.load %arg4[%c0_6, %c0_7] : memref<32x64xbf16, #tpu.memory_space<vmem>>, vector<32x64xbf16>
    %10 = arith.truncf %8 : vector<64x128xf32> to vector<64x128xbf16>
    %cst_8 = arith.constant dense<0.000000e+00> : vector<32x128xf32>
    %11 = tpu.matmul %9, %10, %cst_8 {dimension_numbers = #tpu.dot_dimension_numbers<[1], [0], [0], [1], [0, 0, 1, 1], [], []>} : vector<32x64xbf16>, vector<64x128xbf16>, vector<32x128xf32> -> vector<32x128xf32>
    %c0_9 = arith.constant 0 : index
    %c0_10 = arith.constant 0 : index
    %12 = vector.load %arg5[%c0_9, %c0_10] : memref<32x1xf32, #tpu.memory_space<vmem>>, vector<32x1xf32>
    %13 = vector.broadcast %12 : vector<32x1xf32> to vector<32x128xf32>
    %14 = arith.addf %11, %13 : vector<32x128xf32>
    %cst_11 = arith.constant 0.000000e+00 : f32
    %15 = vector.broadcast %cst_11 : f32 to vector<32x128xf32>
    %16 = arith.maximumf %14, %15 : vector<32x128xf32>
    %c0_12 = arith.constant 0 : index
    %c0_13 = arith.constant 0 : index
    %17 = vector.load %arg6[%c0_12, %c0_13] : memref<2x32xbf16, #tpu.memory_space<vmem>>, vector<2x32xbf16>
    %18 = arith.truncf %16 : vector<32x128xf32> to vector<32x128xbf16>
    %cst_14 = arith.constant dense<0.000000e+00> : vector<2x128xf32>
    %19 = tpu.matmul %17, %18, %cst_14 {dimension_numbers = #tpu.dot_dimension_numbers<[1], [0], [0], [1], [0, 0, 1, 1], [], []>} : vector<2x32xbf16>, vector<32x128xbf16>, vector<2x128xf32> -> vector<2x128xf32>
    %c0_15 = arith.constant 0 : index
    %c0_16 = arith.constant 0 : index
    %20 = vector.load %arg7[%c0_15, %c0_16] : memref<2x1xf32, #tpu.memory_space<vmem>>, vector<2x1xf32>
    %21 = vector.broadcast %20 : vector<2x1xf32> to vector<2x128xf32>
    %22 = arith.addf %19, %21 : vector<2x128xf32>
    %c0_17 = arith.constant 0 : index
    %c0_18 = arith.constant 0 : index
    %23 = vector.load %arg8[%c0_17, %c0_18] : memref<2x128xf32, #tpu.memory_space<vmem>>, vector<2x128xf32>
    tpu.vector_store %arg8[%c0_17, %c0_18], %22 {strides = array<i32>} : memref<2x128xf32, #tpu.memory_space<vmem>>, vector<2x128xf32>,
    return
  }
  func.func @transform_0(%arg0: i32) -> (i32, i32) {
    %c0_i32 = arith.constant 0 : i32
    %c0_i32_0 = arith.constant 0 : i32
    return %arg0, %c0_i32 : i32, i32
  }
  func.func @transform_1(%arg0: i32) -> (i32, i32) {
    %c0_i32 = arith.constant 0 : i32
    %c0_i32_0 = arith.constant 0 : i32
    %c0_i32_1 = arith.constant 0 : i32
    return %c0_i32, %c0_i32_0 : i32, i32
  }
  func.func @transform_2(%arg0: i32) -> (i32, i32) {
    %c0_i32 = arith.constant 0 : i32
    %c0_i32_0 = arith.constant 0 : i32
    %c0_i32_1 = arith.constant 0 : i32
    return %c0_i32, %c0_i32_0 : i32, i32
  }
  func.func @transform_3(%arg0: i32) -> (i32, i32) {
    %c0_i32 = arith.constant 0 : i32
    %c0_i32_0 = arith.constant 0 : i32
    %c0_i32_1 = arith.constant 0 : i32
    return %c0_i32, %c0_i32_0 : i32, i32
  }
  func.func @transform_4(%arg0: i32) -> (i32, i32) {
    %c0_i32 = arith.constant 0 : i32
    %c0_i32_0 = arith.constant 0 : i32
    %c0_i32_1 = arith.constant 0 : i32
    return %c0_i32, %c0_i32_0 : i32, i32
  }
  func.func @transform_5(%arg0: i32) -> (i32, i32) {
    %c0_i32 = arith.constant 0 : i32
    %c0_i32_0 = arith.constant 0 : i32
    %c0_i32_1 = arith.constant 0 : i32
    return %c0_i32, %c0_i32_0 : i32, i32
  }
  func.func @transform_6(%arg0: i32) -> (i32, i32) {
    %c0_i32 = arith.constant 0 : i32
    %c0_i32_0 = arith.constant 0 : i32
    %c0_i32_1 = arith.constant 0 : i32
    return %c0_i32, %c0_i32_0 : i32, i32
  }
  func.func @transform_7(%arg0: i32) -> (i32, i32) {
    %c0_i32 = arith.constant 0 : i32
    %c0_i32_0 = arith.constant 0 : i32
    return %c0_i32, %arg0 : i32, i32
  }
}

</mosaic_0001>

<bundles_post_ra>
// kernel: tpu_custom_call.1
= control target key start
LH: loop header
LB: loop body
LE: loop exit
PB: predicated region body
PF: predicated region fallthrough
CT: control target
= control target key end

     0   :  { %vm128_vm0 = vcmask 56320   ;;  %v528_v5 = vmov 0   ;;  %s705_s0 = inlined_call_operand.vmem [shape: f32[128,7], index: 0, kind: input, shape index: {}]   ;;  %s706_s1 = inlined_call_operand.vmem [shape: bf16[64,7], index: 1, kind: input, shape index: {}]   ;;  %s707_s2 = inlined_call_operand.vmem [shape: f32[64,1], index: 2, kind: input, shape index: {}]   ;;  %s708_s3 = inlined_call_operand.vmem [shape: bf16[32,64], index: 3, kind: input, shape index: {}]   ;;  %s709_s4 = inlined_call_operand.vmem [shape: f32[32,1], index: 4, kind: input, shape index: {}]   ;;  %s710_s5 = inlined_call_operand.vmem [shape: bf16[2,32], index: 5, kind: input, shape index: {}]   ;;  %s711_s6 = inlined_call_operand.vmem [shape: f32[2,1], index: 6, kind: input, shape index: {}]   ;;  %s712_s7 = inlined_call_operand.hbm [shape: f32[2,128], index: 7, kind: output, shape index: {}]  }
   0x1   :  { %v42_v0 = vld [vmem:[%s705_s0 + $0x70] sm:$0xff]  ;;  %v43_v1 = vld [vmem:[%s705_s0 + $0x78] sm:$0xff]  ;;  %v40_v2 = vld [vmem:[%s705_s0 + $0x60] sm:$0xff]  ;;  %498 = vset.pattern.permute.xlu0 %v528_v5  ;;  %499 = vset.pattern.permute.xlu1 %v528_v5 }
   0x2   :  { %v51_v3 = vpack.c.bf16 %v43_v1, %v42_v0  ;;  %v41_v4 = vld [vmem:[%s705_s0 + $0x68] sm:$0xff]  ;;  %v38_v8 = vld [vmem:[%s705_s0 + $0x50] sm:$0xff]  ;;  %v39_v9 = vld [vmem:[%s705_s0 + $0x58] sm:$0xff] }
   0x3   :  { %v50_v6 = vpack.c.bf16 %v41_v4, %v40_v2  ;;  %v500_v10 = vld [vmem:[%s706_s1] sm:$0xff]   ;;  %v49_v12 = vpack.c.bf16 %v39_v9, %v38_v8  ;;  %v66_v13 = vld [vmem:[%s707_s2 + $0x30] sm:$0xff]  ;;  %v67_v15 = vld [vmem:[%s707_s2 + $0x38] sm:$0xff] }
   0x4   :  { %486 = vmatprep.subr.msk.bf16.mxu0 %vm128_vm0, %v51_v3  ;;  %v163_v7 = vsel %vm128_vm0, %v51_v3, 0  ;;  %458 = vmatprep.mubr.msk.bf16.mxu0 %vm128_vm0, %v500_v10  ;;  %v64_v14 = vld [vmem:[%s707_s2 + $0x20] sm:$0xff]  ;;  %v65_v16 = vld [vmem:[%s707_s2 + $0x28] sm:$0xff]  ;;  %v62_v19 = vld [vmem:[%s707_s2 + $0x10] sm:$0xff] }
   0x5   :  { %443 = vmatpush3.bf16.xpose.msra.mxu0 %v163_v7  ;;  %v160_v11 = vsel %vm128_vm0, %v50_v6, 0  ;;  %100 = vperm.xlu0 %498, %v66_v13   ;;  %v36_v17 = vld [vmem:[%s705_s0 + $0x40] sm:$0xff]  ;;  %v37_v18 = vld [vmem:[%s705_s0 + $0x48] sm:$0xff] }
   0x6   :  { %487 = vmatprep.subr.msk.bf16.mxu0 %vm128_vm0, %v50_v6  ;;  %90 = vperm.xlu1 %499, %v64_v14  }
   0x9   :  { %105 = vperm.xlu0 %498, %v67_v15  }
   0xa   :  { %95 = vperm.xlu1 %499, %v65_v16  }
   0xd   :  { %445 = vmatpush3.bf16.xpose.msra.mxu0 %v160_v11 }
   0xe   :  { %488 = vmatprep.subr.msk.bf16.mxu0 %vm128_vm0, %v49_v12 }
   0xf   :  { %12 = vsyncpa [#allocation3], 0  ;;  %v63_v20 = vld [vmem:[%s707_s2 + $0x18] sm:$0xff]  ;;  %v157_v21 = vsel %vm128_vm0, %v49_v12, 0  ;;  %v48_v22 = vpack.c.bf16 %v37_v18, %v36_v17  ;;  %80 = vperm.xlu0 %498, %v62_v19   ;;  %v60_v23 = vld [vmem:[%s707_s2] sm:$0xff]  ;;  %vm280_vm1 = vcmask 523264  }
  0x10   :  { %85 = vperm.xlu1 %499, %v63_v20   ;;  %v61_v24 = vld [vmem:[%s707_s2 + $0x8] sm:$0xff]  ;;  %v34_v25 = vld [vmem:[%s705_s0 + $0x30] sm:$0xff]  ;;  %v35_v26 = vld [vmem:[%s705_s0 + $0x38] sm:$0xff]  ;;  %vm530_vm2 = vmmov 0   ;;  %vm349_vm3 = vcmask 261120   ;;  %s531_s20 = smov [#allocation2]  }
  0x11   :  { %v248_v27 = vld [vmem:[%s709_s4 + $0x10] sm:$0xff]  ;;  %v249_v28 = vld [vmem:[%s709_s4 + $0x18] sm:$0xff]  ;;  %v154_v29 = vsel %vm128_vm0, %v48_v22, 0  ;;  %v47_v30 = vpack.c.bf16 %v35_v26, %v34_v25  ;;  %v246_v31 = vld [vmem:[%s709_s4] sm:$0xff]  ;;  %s400_s21 = sshll.u32 %s531_s20, 4  ;;  %s401_s21 = int_to_ptr.vmem [resolvable:$true] %s400_s21 }
  0x12   :  { %v247_v32 = vld [vmem:[%s709_s4 + $0x8] sm:$0xff]  ;;  %v32_v33 = vld [vmem:[%s705_s0 + $0x20] sm:$0xff]  ;;  %v30_v38 = vld [vmem:[%s705_s0 + $0x10] sm:$0xff]  ;;  %s506_s22 = scalar_lea.vmem %s401_s21, 32  ;;  %p511_p1 = scmp.lt.s32.totalorder %s401_s21, %s401_s21 }
  0x13   :  { %70 = vperm.xlu0 %498, %v60_v23   ;;  %v33_v34 = vld [vmem:[%s705_s0 + $0x28] sm:$0xff]  ;;  %v343_v35 = vld [vmem:[%s711_s6] sm:$0x3]  ;;  %v151_v36 = vsel %vm128_vm0, %v47_v30, 0  ;;  %v31_v39 = vld [vmem:[%s705_s0 + $0x18] sm:$0xff]  ;;  %p507_p0 = scmp.ne.s32.totalorder %s401_s21, %s506_s22  ;;  %p512_p2 = scmp.lt.s32.totalorder %s506_s22, %s506_s22 }
  0x14   :  { %75 = vperm.xlu1 %499, %v61_v24   ;;  %v46_v37 = vpack.c.bf16 %v33_v34, %v32_v33  ;;  %v45_v41 = vpack.c.bf16 %v31_v39, %v30_v38  ;;  %v28_v42 = vld [vmem:[%s705_s0] sm:$0xff]  ;;  %v29_v43 = vld [vmem:[%s705_s0 + $0x8] sm:$0xff]  ;;  %v502_v48 = vld [vmem:[%s706_s1 + $0x10] sm:$0xff]   ;;  %v529_v24 = vmov 0.0  }
  0x15   :  { %447 = vmatpush3.bf16.xpose.msra.mxu0 %v157_v21  ;;  %v44_v45 = vpack.c.bf16 %v29_v43, %v28_v42  ;;  %v501_v47 = vld [vmem:[%s706_s1 + $0x8] sm:$0xff]   ;;  %v503_v49 = vld [vmem:[%s706_s1 + $0x18] sm:$0xff]   ;;  %v504_v50 = vld [vmem:[%s708_s3] sm:$0xff]   ;;  %p513_p3 = por %p512_p2, %p511_p1 }
  0x16   :  { %489 = vmatprep.subr.msk.bf16.mxu0 %vm128_vm0, %v48_v22  ;;  %v148_v40 = vsel %vm128_vm0, %v46_v37, 0  ;;  %v145_v44 = vsel %vm128_vm0, %v45_v41, 0  ;;  %474 = vmatprep.mubr.msk.bf16.mxu1 %vm280_vm1, %v504_v50  ;;  %v505_v23 = vld [vmem:[%s708_s3 + $0x8] sm:$0xff]   ;;  %v340_v43 = vld [vmem:[%s710_s5] sm:$0x1] }
  0x17   :  { %262 = vperm.xlu0 %498, %v248_v27   ;;  %v142_v46 = vsel %vm128_vm0, %v44_v45, 0  ;;  %p514_p4 = pnand %p513_p3, %p507_p0 }
  0x18   :  { %267 = vperm.xlu1 %499, %v249_v28  }
  0x1b   :  { %252 = vperm.xlu0 %498, %v246_v31  }
  0x1c   :  { %257 = vperm.xlu1 %499, %v247_v32  }
  0x1d   :  { %449 = vmatpush3.bf16.xpose.msra.mxu0 %v154_v29 }
  0x1e   :  { %490 = vmatprep.subr.msk.bf16.mxu0 %vm128_vm0, %v47_v30 }
  0x1f   :  { %346 = vperm.xlu0 %498, %v343_v35  }
  0x25   :  { %451 = vmatpush3.bf16.xpose.msra.mxu0 %v151_v36 }
  0x26   :  { %491 = vmatprep.subr.msk.bf16.mxu0 %vm128_vm0, %v46_v37 }
  0x2d   :  { %453 = vmatpush3.bf16.xpose.msra.mxu0 %v148_v40 }
  0x2e   :  { %492 = vmatprep.subr.msk.bf16.mxu0 %vm128_vm0, %v45_v41 }
  0x35   :  { %455 = vmatpush3.bf16.xpose.msra.mxu0 %v145_v44 }
  0x36   :  { %493 = vmatprep.subr.msk.bf16.mxu0 %vm128_vm0, %v44_v45 }
  0x3d   :  { %457 = vmatpush3.bf16.xpose.msra.mxu0 %v142_v46 }
  0x44   :  { %459 = vmatmul.mubr.msk.bf16.vlgmr.msra.gmra.mxu0 %vm128_vm0, %v501_v47 }
  0x45   :  { %462 = vmatprep.mubr.msk.bf16.mxu0 %vm128_vm0, %v502_v48 }
  0x4c   :  { %463 = vmatmul.mubr.msk.bf16.gmra.mxu0 %vm128_vm0, %v503_v49 }
  0x80   :  { %v101_v53 = vpop.permute.xlu0 %100 }
  0x81   :  { %v91_v51 = vpop.permute.xlu1 %90 }
  0x84   :  { %v106_v58 = vpop.permute.xlu0 %105 }
  0x85   :  { %v96_v56 = vpop.permute.xlu1 %95 }
  0x8a   :  { %v81_v2 = vpop.permute.xlu0 %80 }
  0x8b   :  { %v86_v62 = vpop.permute.xlu1 %85 }
  0x8e   :  { %v71_v16 = vpop.permute.xlu0 %70 }
  0x8f   :  { %v76_v12 = vpop.permute.xlu1 %75 }
  0x92   :  { %v263_v25 = vpop.permute.xlu0 %262 }
  0x93   :  { %v268_v26 = vpop.permute.xlu1 %267 }
  0x96   :  { %v253_v31 = vpop.permute.xlu0 %252 }
  0x97   :  { %v258_v33 = vpop.permute.xlu1 %257 }
  0x9a   :  { %v347_v44 = vpop.permute.xlu0 %346 }
 0x104   :  { %v460_v52 = vpop.f32.mrf.mxu0 }
 0x105   :  { %v208_v8 = vadd.f32 %v460_v52, %v81_v2 }
 0x106   :  { %v199_v54 = vpop.f32.mrf.mxu0 }
 0x107   :  { %v232_v17 = vmax.f32 %v208_v8, 0.0  ;;  %v200_v18 = vadd.f32 %v199_v54, %v71_v16 }
 0x108   :  { %v461_v55 = vpop.f32.mrf.mxu0 }
 0x109   :  { %v211_v4 = vadd.f32 %v461_v55, %v86_v62  ;;  %v230_v21 = vmax.f32 %v200_v18, 0.0 }
 0x10a   :  { %v202_v57 = vpop.f32.mrf.mxu0 }
 0x10b   :  { %v233_v13 = vmax.f32 %v211_v4, 0.0  ;;  %v203_v14 = vadd.f32 %v202_v57, %v76_v12 }
 0x10c   :  { %v464_v59 = vpop.f32.mrf.mxu0 }
 0x10d   :  { %v224_v61 = vadd.f32 %v464_v59, %v101_v53  ;;  %v243_v19 = vpack.c.bf16 %v233_v13, %v232_v17  ;;  %v231_v20 = vmax.f32 %v203_v14, 0.0 }
 0x10e   :  { %v215_v60 = vpop.f32.mrf.mxu0 }
 0x10f   :  { %v216_v0 = vadd.f32 %v215_v60, %v91_v51  ;;  %v236_v5 = vmax.f32 %v224_v61, 0.0  ;;  %v242_v22 = vpack.c.bf16 %v231_v20, %v230_v21 }
 0x110   :  { %v465_v63 = vpop.f32.mrf.mxu0 }
 0x111   :  { %v227_v1 = vadd.f32 %v465_v63, %v106_v58  ;;  %v234_v9 = vmax.f32 %v216_v0, 0.0 }
 0x112   :  { %v218_v3 = vpop.f32.mrf.mxu0 }
 0x113   :  { %v237_v6 = vmax.f32 %v227_v1, 0.0  ;;  %v219_v7 = vadd.f32 %v218_v3, %v96_v56 }
 0x115   :  { %v235_v10 = vmax.f32 %v219_v7, 0.0  ;;  %v245_v11 = vpack.c.bf16 %v237_v6, %v236_v5 }
 0x117   :  { %v244_v15 = vpack.c.bf16 %v235_v10, %v234_v9  ;;  %466 = vmatprep.subr.bf16.mxu1 %v245_v11 }
 0x118   :  { %467 = vmatpush3.bf16.msra.mxu1 %v245_v11 }
 0x119   :  { %468 = vmatprep.subr.bf16.mxu1 %v244_v15 }
 0x11c   :  { %469 = vmatpush3.bf16.msra.mxu1 %v244_v15 }
 0x11d   :  { %470 = vmatprep.subr.bf16.mxu1 %v243_v19 }
 0x120   :  { %471 = vmatpush3.bf16.msra.mxu1 %v243_v19 }
 0x121   :  { %472 = vmatprep.subr.bf16.mxu1 %v242_v22 }
 0x124   :  { %473 = vmatpush3.bf16.msra.mxu1 %v242_v22 }
 0x125   :  { %478 = vmatprep.subr.bf16.mxu1 %v529_v24 }
 0x127   :  { %475 = vmatmul.mubr.msk.bf16.vlgmr.msra.gmra.mxu1 %vm280_vm1, %v505_v23 }
 0x128   :  { %482 = vmatprep.mubr.msk.bf16.mxu1 %vm530_vm2, %v529_v24 }
 0x1e7   :  { %v476_v27 = vpop.f32.mrf.mxu1 }
 0x1e8   :  { %v330_v29 = vadd.f32 %v476_v27, %v263_v25 }
 0x1e9   :  { %v321_v28 = vpop.f32.mrf.mxu1 }
 0x1ea   :  { %v338_v35 = vmax.f32 %v330_v29, 0.0  ;;  %v322_v36 = vadd.f32 %v321_v28, %v253_v31 }
 0x1eb   :  { %v477_v30 = vpop.f32.mrf.mxu1 }
 0x1ec   :  { %v333_v32 = vadd.f32 %v477_v30, %v268_v26  ;;  %v336_v41 = vmax.f32 %v322_v36, 0.0 }
 0x1ed   :  { %v324_v34 = vpop.f32.mrf.mxu1 }
 0x1ee   :  { %v339_v37 = vmax.f32 %v333_v32, 0.0  ;;  %v325_v38 = vadd.f32 %v324_v34, %v258_v33 }
 0x1f0   :  { %v342_v39 = vpack.c.bf16 %v339_v37, %v338_v35  ;;  %v337_v40 = vmax.f32 %v325_v38, 0.0 }
 0x1f2   :  { %479 = vmatpush3.bf16.msra.mxu1 %v342_v39  ;;  %v341_v42 = vpack.c.bf16 %v337_v40, %v336_v41 }
 0x1f3   :  { %480 = vmatprep.subr.bf16.mxu1 %v529_v24 }
 0x1f6   :  { %481 = vmatpush3.bf16.msra.mxu1 %v341_v42 }
 0x1f9   :  { %483 = vmatmul.mubr.msk.bf16.vlgmr.msra.gmra.mxu1 %vm349_vm3, %v340_v43 }
 0x2b9   :  { %v387_v45 = vpop.f32.mrf.mxu1 }
 0x2ba   :  { %v388_v46 = vadd.f32 %v387_v45, %v347_v44 }
 0x2bb   :  { %v484_v47 = vpop.f32.mrf.mxu1 }
 0x2bc   :  { %393 = vst [vmem:[#allocation2] sm:$0x3] %v388_v46 }
 0x2bd   :  { %v390_v48 = vpop.f32.mrf.mxu1 }
 0x2be   :  { %517 = shalt.err (!%p514_p4)
}
 0x2bf   :  { %403 = dma.vmem_to_hbm [thread:$0]  %s401_s21, 32, %s712_s7, [#allocation3]   ;;  %v485_v49 = vpop.f32.mrf.mxu1 }
 0x2c0   :  { %526 = dma.done.wait [#allocation3], 32  }
 0x2c1   :  { %527 = vsyncadd [#allocation3], 4294967264 }
 0x2c2   :  { %407 = vsyncpa [#allocation3], 1 }

</bundles_post_ra>
